<compile_context>
chip_gen: v6e
topology: v6e:2x2x1
jax: 0.10.0
libtpu: 0.0.40
codegen_flags: <defaults>
</compile_context>

<pallas_src>
import jax
import jax.numpy as jnp
from jax import lax
from jax.experimental import pallas as pl
from jax.experimental.pallas import tpu as pltpu

EPS = 1e-5  # modules.LayerNorm / F.layer_norm default


def duration_predictor_kernel(x_ref, m_ref,
                              w1_ref, b1_ref, g1_ref, be1_ref,
                              w2_ref, b2_ref, g2_ref, be2_ref,
                              wp_ref, bp_ref,
                              out_ref,
                              p1_ref, p2_ref):
    B, Cin, T = x_ref.shape
    F = w1_ref.shape[0]
    K = w1_ref.shape[1] // Cin
    pad = K // 2
    inv_f = 1.0 / F

    m = m_ref[...]                              # (1, B*T) lane-dense mask

    # Pre-zero the padded scratch slabs once; only interior columns are
    # written below, so the K//2 halo columns at both ends stay zero
    # (this is the "same" conv padding).
    p1_ref[...] = jnp.zeros_like(p1_ref)
    p2_ref[...] = jnp.zeros_like(p2_ref)

    # Stage conv_1 input: (x * mask) into the interior columns of p1.
    for b in range(B):                          # static unroll, B is tiny
        p1_ref[b, :, pl.ds(pad, T)] = x_ref[b] * m[:, b * T:(b + 1) * T]

    def conv_im2col(p_ref, w_ref, b_ref):
        # Build the (K*C, B*T) im2col slab from the padded scratch so the
        # whole conv over all batches is a single MXU matmul.
        slab = jnp.concatenate(
            [jnp.concatenate([p_ref[b, :, pl.ds(k, T)] for k in range(K)],
                             axis=0)
             for b in range(B)], axis=1)
        return jnp.dot(w_ref[...], slab,
                       preferred_element_type=jnp.float32) + b_ref[...]

    def layer_norm(h, g_ref, be_ref):
        # Channel-wise LayerNorm per time step (channels on sublanes).
        mu = jnp.sum(h, axis=0, keepdims=True) * inv_f
        d = h - mu
        var = jnp.sum(d * d, axis=0, keepdims=True) * inv_f
        return d * lax.rsqrt(var + EPS) * g_ref[...] + be_ref[...]

    # ---- conv_1 -> relu -> norm_1 (dropout = identity, eval mode) ----
    h = jnp.maximum(conv_im2col(p1_ref, w1_ref, b1_ref), 0.0)
    h = layer_norm(h, g1_ref, be1_ref)

    # ---- mask, stage conv_2 input into p2 interior ----
    hm = h * m
    for b in range(B):
        p2_ref[b, :, pl.ds(pad, T)] = hm[:, b * T:(b + 1) * T]

    # ---- conv_2 -> relu -> norm_2 ----
    h = jnp.maximum(conv_im2col(p2_ref, w2_ref, b2_ref), 0.0)
    h = layer_norm(h, g2_ref, be2_ref)

    # ---- proj (1x1 conv) as VPU multiply + sublane reduction, then mask ----
    y = jnp.sum((h * m) * wp_ref[...], axis=0, keepdims=True) + bp_ref[...]
    y = y * m                                   # (1, B*T)
    for b in range(B):
        out_ref[b] = y[:, b * T:(b + 1) * T]    # lane-dense (1, T) rows


def duration_predictor(x_bct, mask_b1t, params):
    """x_bct: (B, Cin, T) f32 (PyTorch NCW layout), mask_b1t: (B, 1, T) f32.

    Returns (B, 1, T) f32, matching DurationPredictor.forward(x, x_mask).
    """
    B, Cin, T = x_bct.shape
    (w1, b1, g1, be1, w2, b2, g2, be2, wp, bp) = params
    F = w1.shape[0]
    K = w1.shape[1] // Cin
    pad = K // 2

    # Lane-dense mask: (B, 1, T) -> (1, B*T) (free wrapper-side reshape).
    mask_wide = mask_b1t.reshape(1, B * T)

    full = lambda s: pl.BlockSpec(s, lambda i: (0,) * len(s))
    return pl.pallas_call(
        duration_predictor_kernel,
        out_shape=jax.ShapeDtypeStruct((B, 1, T), jnp.float32),
        grid=(1,),  # single step: the whole (B, T) problem in one invocation
        in_specs=[
            full((B, Cin, T)),                  # x (NCW, as in PyTorch)
            full((1, B * T)),                   # mask, lane-dense
            full((F, K * Cin)), full((F, 1)),   # conv_1 weight (im2col), bias
            full((F, 1)), full((F, 1)),         # norm_1 gamma, beta
            full((F, K * F)), full((F, 1)),     # conv_2 weight (im2col), bias
            full((F, 1)), full((F, 1)),         # norm_2 gamma, beta
            full((F, 1)), full((1, 1)),         # proj weight column, bias
        ],
        out_specs=full((B, 1, T)),
        scratch_shapes=[
            pltpu.VMEM((B, Cin, T + 2 * pad), jnp.float32),  # padded conv_1 in
            pltpu.VMEM((B, F, T + 2 * pad), jnp.float32),    # padded conv_2 in
        ],
        compiler_params=pltpu.CompilerParams(
            dimension_semantics=("arbitrary",)),
    )(x_bct, mask_wide, w1, b1, g1, be1, w2, b2, g2, be2, wp, bp)


# ----------------------------- pure-JAX reference -----------------------------

def _conv1d_ref(x_ncw, w_oik, b):
    pad = w_oik.shape[-1] // 2
    y = lax.conv_general_dilated(x_ncw, w_oik, window_strides=(1,),
                                 padding=[(pad, pad)],
                                 dimension_numbers=('NCH', 'OIH', 'NCH'))
    return y + b[None, :, None]


def _layer_norm_ref(x_ncw, gamma, beta):
    mu = jnp.mean(x_ncw, axis=1, keepdims=True)
    var = jnp.mean((x_ncw - mu) ** 2, axis=1, keepdims=True)
    return (x_ncw - mu) * lax.rsqrt(var + EPS) * gamma[None, :, None] + beta[None, :, None]


def duration_predictor_ref(x_ncw, mask_n1w, torch_params):
    (w1, b1, g1, be1, w2, b2, g2, be2, wp, bp) = torch_params
    h = _conv1d_ref(x_ncw * mask_n1w, w1, b1)
    h = jnp.maximum(h, 0.0)
    h = _layer_norm_ref(h, g1, be1)
    h = _conv1d_ref(h * mask_n1w, w2, b2)
    h = jnp.maximum(h, 0.0)
    h = _layer_norm_ref(h, g2, be2)
    h = _conv1d_ref(h * mask_n1w, wp, bp)
    return h * mask_n1w


# ----------------------------------- main -----------------------------------

if __name__ == "__main__":
    B, T = 2, 16
    in_channels, filter_channels, kernel_size = 16, 32, 3
    p_dropout = 0.5  # inactive (eval mode)

    key = jax.random.PRNGKey(0)
    ks = jax.random.split(key, 8)

    # PyTorch-convention parameter shapes (Conv1d weight: (Cout, Cin, K)).
    w1_t = jax.random.normal(ks[0], (filter_channels, in_channels, kernel_size), jnp.float32) * 0.1
    b1_t = jax.random.normal(ks[1], (filter_channels,), jnp.float32) * 0.1
    w2_t = jax.random.normal(ks[2], (filter_channels, filter_channels, kernel_size), jnp.float32) * 0.1
    b2_t = jax.random.normal(ks[3], (filter_channels,), jnp.float32) * 0.1
    wp_t = jax.random.normal(ks[4], (1, filter_channels, 1), jnp.float32) * 0.1
    bp_t = jax.random.normal(ks[5], (1,), jnp.float32) * 0.1
    gamma1 = jnp.ones((filter_channels,), jnp.float32)
    beta1 = jnp.zeros((filter_channels,), jnp.float32)
    gamma2 = jnp.ones((filter_channels,), jnp.float32) * 1.1
    beta2 = jnp.ones((filter_channels,), jnp.float32) * 0.05

    # Inputs in PyTorch layout: x (B, Cin, T), mask (B, 1, T).
    x_ncw = jax.random.normal(ks[6], (B, in_channels, T), jnp.float32)
    lengths = jnp.array([T, 12], jnp.int32)
    mask_n1w = (jnp.arange(T)[None, :] < lengths[:, None]).astype(jnp.float32)[:, None, :]

    # Kernel-layout parameters (wrapper-side layout plumbing, free):
    #   conv weights reshaped for im2col: W[o, k*Cin + i] = torch_w[o, i, k]
    #   biases / gamma / beta / proj weight as (F, 1) columns.
    kernel_params = (
        jnp.transpose(w1_t, (0, 2, 1)).reshape(filter_channels, kernel_size * in_channels),
        b1_t[:, None], gamma1[:, None], beta1[:, None],
        jnp.transpose(w2_t, (0, 2, 1)).reshape(filter_channels, kernel_size * filter_channels),
        b2_t[:, None], gamma2[:, None], beta2[:, None],
        wp_t[0],                 # (F, 1)
        bp_t[:, None],           # (1, 1)
    )

    out_b1t = jax.block_until_ready(duration_predictor(x_ncw, mask_n1w, kernel_params))

    # Cross-check against a plain-JAX reference in PyTorch layout.
    torch_params = (w1_t, b1_t, gamma1, beta1, w2_t, b2_t, gamma2, beta2, wp_t, bp_t)
    ref_n1w = duration_predictor_ref(x_ncw, mask_n1w, torch_params)

    assert out_b1t.shape == (B, 1, T)
    assert jnp.allclose(out_b1t, ref_n1w, atol=1e-4, rtol=1e-4), \
        float(jnp.max(jnp.abs(out_b1t - ref_n1w)))

    print("KERNEL_OK")
</pallas_src>

<mosaic_0001>
module attributes {stable_mosaic.version = 11 : i64} {
  func.func @duration_predictor_kernel(%arg0: i32, %arg1: memref<2x16x16xf32, #tpu.memory_space<vmem>>, %arg2: memref<1x32xf32, #tpu.memory_space<vmem>>, %arg3: memref<32x48xf32, #tpu.memory_space<vmem>>, %arg4: memref<32x1xf32, #tpu.memory_space<vmem>>, %arg5: memref<32x1xf32, #tpu.memory_space<vmem>>, %arg6: memref<32x1xf32, #tpu.memory_space<vmem>>, %arg7: memref<32x96xf32, #tpu.memory_space<vmem>>, %arg8: memref<32x1xf32, #tpu.memory_space<vmem>>, %arg9: memref<32x1xf32, #tpu.memory_space<vmem>>, %arg10: memref<32x1xf32, #tpu.memory_space<vmem>>, %arg11: memref<32x1xf32, #tpu.memory_space<vmem>>, %arg12: memref<1x1xf32, #tpu.memory_space<vmem>>, %arg13: memref<2x1x16xf32, #tpu.memory_space<vmem>>, %arg14: memref<2x16x18xf32, #tpu.memory_space<vmem>>, %arg15: memref<2x32x18xf32, #tpu.memory_space<vmem>>) attributes {dimension_semantics = [#tpu.dimension_semantics<arbitrary>], iteration_bounds = array<i64: 1>, scalar_prefetch = 0 : i64, scratch_operands = 2 : i64, tpu.core_type = #tpu.core_type<tc>, window_params = [{pipeline_mode = #tpu.pipeline_mode<synchronous>, transform_indices = @transform_0, window_bounds = array<i64: 2, 16, 16>}, {pipeline_mode = #tpu.pipeline_mode<synchronous>, transform_indices = @transform_1, window_bounds = array<i64: 1, 32>}, {pipeline_mode = #tpu.pipeline_mode<synchronous>, transform_indices = @transform_2, window_bounds = array<i64: 32, 48>}, {pipeline_mode = #tpu.pipeline_mode<synchronous>, transform_indices = @transform_3, window_bounds = array<i64: 32, 1>}, {pipeline_mode = #tpu.pipeline_mode<synchronous>, transform_indices = @transform_4, window_bounds = array<i64: 32, 1>}, {pipeline_mode = #tpu.pipeline_mode<synchronous>, transform_indices = @transform_5, window_bounds = array<i64: 32, 1>}, {pipeline_mode = #tpu.pipeline_mode<synchronous>, transform_indices = @transform_6, window_bounds = array<i64: 32, 96>}, {pipeline_mode = #tpu.pipeline_mode<synchronous>, transform_indices = @transform_7, window_bounds = array<i64: 32, 1>}, {pipeline_mode = #tpu.pipeline_mode<synchronous>, transform_indices = @transform_8, window_bounds = array<i64: 32, 1>}, {pipeline_mode = #tpu.pipeline_mode<synchronous>, transform_indices = @transform_9, window_bounds = array<i64: 32, 1>}, {pipeline_mode = #tpu.pipeline_mode<synchronous>, transform_indices = @transform_10, window_bounds = array<i64: 32, 1>}, {pipeline_mode = #tpu.pipeline_mode<synchronous>, transform_indices = @transform_11, window_bounds = array<i64: 1, 1>}, {pipeline_mode = #tpu.pipeline_mode<synchronous>, transform_indices = @transform_12, window_bounds = array<i64: 2, 1, 16>}]} {
    %c0 = arith.constant 0 : index
    %c0_0 = arith.constant 0 : index
    %0 = vector.load %arg2[%c0, %c0_0] : memref<1x32xf32, #tpu.memory_space<vmem>>, vector<1x32xf32>
    %cst = arith.constant 0.000000e+00 : f32
    %1 = vector.broadcast %cst : f32 to vector<2x16x18xf32>
    %c0_1 = arith.constant 0 : index
    %c0_2 = arith.constant 0 : index
    %c0_3 = arith.constant 0 : index
    %2 = vector.load %arg14[%c0_1, %c0_2, %c0_3] : memref<2x16x18xf32, #tpu.memory_space<vmem>>, vector<2x16x18xf32>
    tpu.vector_store %arg14[%c0_1, %c0_2, %c0_3], %1 {strides = array<i32>} : memref<2x16x18xf32, #tpu.memory_space<vmem>>, vector<2x16x18xf32>,
    %cst_4 = arith.constant 0.000000e+00 : f32
    %3 = vector.broadcast %cst_4 : f32 to vector<2x32x18xf32>
    %c0_5 = arith.constant 0 : index
    %c0_6 = arith.constant 0 : index
    %c0_7 = arith.constant 0 : index
    %4 = vector.load %arg15[%c0_5, %c0_6, %c0_7] : memref<2x32x18xf32, #tpu.memory_space<vmem>>, vector<2x32x18xf32>
    tpu.vector_store %arg15[%c0_5, %c0_6, %c0_7], %3 {strides = array<i32>} : memref<2x32x18xf32, #tpu.memory_space<vmem>>, vector<2x32x18xf32>,
    %c0_8 = arith.constant 0 : index
    %c0_9 = arith.constant 0 : index
    %c0_10 = arith.constant 0 : index
    %5 = vector.load %arg1[%c0_8, %c0_9, %c0_10] : memref<2x16x16xf32, #tpu.memory_space<vmem>>, vector<1x16x16xf32>
    %6 = vector.shape_cast %5 : vector<1x16x16xf32> to vector<16x16xf32>
    %7 = vector.extract_strided_slice %0 {offsets = [0, 0], sizes = [1, 16], strides = [1, 1]} : vector<1x32xf32> to vector<1x16xf32>
    %8 = vector.broadcast %7 : vector<1x16xf32> to vector<16x16xf32>
    %9 = arith.mulf %6, %8 : vector<16x16xf32>
    %c0_11 = arith.constant 0 : index
    %c0_12 = arith.constant 0 : index
    %c1 = arith.constant 1 : index
    %10 = vector.load %arg14[%c0_11, %c0_12, %c1] : memref<2x16x18xf32, #tpu.memory_space<vmem>>, vector<1x16x16xf32>
    %11 = vector.shape_cast %10 : vector<1x16x16xf32> to vector<16x16xf32>
    %12 = vector.shape_cast %9 : vector<16x16xf32> to vector<1x16x16xf32>
    tpu.vector_store %arg14[%c0_11, %c0_12, %c1], %12 {strides = array<i32>} : memref<2x16x18xf32, #tpu.memory_space<vmem>>, vector<1x16x16xf32>,
    %c1_13 = arith.constant 1 : index
    %c0_14 = arith.constant 0 : index
    %c0_15 = arith.constant 0 : index
    %13 = vector.load %arg1[%c1_13, %c0_14, %c0_15] : memref<2x16x16xf32, #tpu.memory_space<vmem>>, vector<1x16x16xf32>
    %14 = vector.shape_cast %13 : vector<1x16x16xf32> to vector<16x16xf32>
    %15 = vector.extract_strided_slice %0 {offsets = [0, 16], sizes = [1, 16], strides = [1, 1]} : vector<1x32xf32> to vector<1x16xf32>
    %16 = vector.broadcast %15 : vector<1x16xf32> to vector<16x16xf32>
    %17 = arith.mulf %14, %16 : vector<16x16xf32>
    %c1_16 = arith.constant 1 : index
    %c0_17 = arith.constant 0 : index
    %c1_18 = arith.constant 1 : index
    %18 = vector.load %arg14[%c1_16, %c0_17, %c1_18] : memref<2x16x18xf32, #tpu.memory_space<vmem>>, vector<1x16x16xf32>
    %19 = vector.shape_cast %18 : vector<1x16x16xf32> to vector<16x16xf32>
    %20 = vector.shape_cast %17 : vector<16x16xf32> to vector<1x16x16xf32>
    tpu.vector_store %arg14[%c1_16, %c0_17, %c1_18], %20 {strides = array<i32>} : memref<2x16x18xf32, #tpu.memory_space<vmem>>, vector<1x16x16xf32>,
    %c0_19 = arith.constant 0 : index
    %c0_20 = arith.constant 0 : index
    %c0_21 = arith.constant 0 : index
    %21 = vector.load %arg14[%c0_19, %c0_20, %c0_21] : memref<2x16x18xf32, #tpu.memory_space<vmem>>, vector<1x16x16xf32>
    %22 = vector.shape_cast %21 : vector<1x16x16xf32> to vector<16x16xf32>
    %c0_22 = arith.constant 0 : index
    %c0_23 = arith.constant 0 : index
    %c1_24 = arith.constant 1 : index
    %23 = vector.load %arg14[%c0_22, %c0_23, %c1_24] : memref<2x16x18xf32, #tpu.memory_space<vmem>>, vector<1x16x16xf32>
    %24 = vector.shape_cast %23 : vector<1x16x16xf32> to vector<16x16xf32>
    %c0_25 = arith.constant 0 : index
    %c0_26 = arith.constant 0 : index
    %c2 = arith.constant 2 : index
    %25 = vector.load %arg14[%c0_25, %c0_26, %c2] : memref<2x16x18xf32, #tpu.memory_space<vmem>>, vector<1x16x16xf32>
    %26 = vector.shape_cast %25 : vector<1x16x16xf32> to vector<16x16xf32>
    %27 = tpu.concatenate %22, %24, %26 in 0 : vector<16x16xf32>, vector<16x16xf32>, vector<16x16xf32> -> vector<48x16xf32>
    %c1_27 = arith.constant 1 : index
    %c0_28 = arith.constant 0 : index
    %c0_29 = arith.constant 0 : index
    %28 = vector.load %arg14[%c1_27, %c0_28, %c0_29] : memref<2x16x18xf32, #tpu.memory_space<vmem>>, vector<1x16x16xf32>
    %29 = vector.shape_cast %28 : vector<1x16x16xf32> to vector<16x16xf32>
    %c1_30 = arith.constant 1 : index
    %c0_31 = arith.constant 0 : index
    %c1_32 = arith.constant 1 : index
    %30 = vector.load %arg14[%c1_30, %c0_31, %c1_32] : memref<2x16x18xf32, #tpu.memory_space<vmem>>, vector<1x16x16xf32>
    %31 = vector.shape_cast %30 : vector<1x16x16xf32> to vector<16x16xf32>
    %c1_33 = arith.constant 1 : index
    %c0_34 = arith.constant 0 : index
    %c2_35 = arith.constant 2 : index
    %32 = vector.load %arg14[%c1_33, %c0_34, %c2_35] : memref<2x16x18xf32, #tpu.memory_space<vmem>>, vector<1x16x16xf32>
    %33 = vector.shape_cast %32 : vector<1x16x16xf32> to vector<16x16xf32>
    %34 = tpu.concatenate %29, %31, %33 in 0 : vector<16x16xf32>, vector<16x16xf32>, vector<16x16xf32> -> vector<48x16xf32>
    %35 = tpu.concatenate %27, %34 in 1 : vector<48x16xf32>, vector<48x16xf32> -> vector<48x32xf32>
    %c0_36 = arith.constant 0 : index
    %c0_37 = arith.constant 0 : index
    %36 = vector.load %arg3[%c0_36, %c0_37] : memref<32x48xf32, #tpu.memory_space<vmem>>, vector<32x48xf32>
    %cst_38 = arith.constant dense<0.000000e+00> : vector<32x32xf32>
    %37 = tpu.matmul %36, %35, %cst_38 {dimension_numbers = #tpu.dot_dimension_numbers<[1], [0], [0], [1], [0, 0, 1, 1], [], []>} : vector<32x48xf32>, vector<48x32xf32>, vector<32x32xf32> -> vector<32x32xf32>
    %c0_39 = arith.constant 0 : index
    %c0_40 = arith.constant 0 : index
    %38 = vector.load %arg4[%c0_39, %c0_40] : memref<32x1xf32, #tpu.memory_space<vmem>>, vector<32x1xf32>
    %39 = vector.broadcast %38 : vector<32x1xf32> to vector<32x32xf32>
    %40 = arith.addf %37, %39 : vector<32x32xf32>
    %cst_41 = arith.constant 0.000000e+00 : f32
    %41 = vector.broadcast %cst_41 : f32 to vector<32x32xf32>
    %42 = arith.maximumf %40, %41 : vector<32x32xf32>
    %cst_42 = arith.constant dense<0.000000e+00> : vector<32xf32>
    %43 = vector.multi_reduction <add>, %42, %cst_42 [0] : vector<32x32xf32> to vector<32xf32>
    %44 = vector.shape_cast %43 : vector<32xf32> to vector<1x32xf32>
    %cst_43 = arith.constant 3.125000e-02 : f32
    %45 = vector.broadcast %cst_43 : f32 to vector<1x32xf32>
    %46 = arith.mulf %44, %45 : vector<1x32xf32>
    %47 = vector.broadcast %46 : vector<1x32xf32> to vector<32x32xf32>
    %48 = arith.subf %42, %47 : vector<32x32xf32>
    %49 = arith.mulf %48, %48 : vector<32x32xf32>
    %cst_44 = arith.constant dense<0.000000e+00> : vector<32xf32>
    %50 = vector.multi_reduction <add>, %49, %cst_44 [0] : vector<32x32xf32> to vector<32xf32>
    %51 = vector.shape_cast %50 : vector<32xf32> to vector<1x32xf32>
    %cst_45 = arith.constant 3.125000e-02 : f32
    %52 = vector.broadcast %cst_45 : f32 to vector<1x32xf32>
    %53 = arith.mulf %51, %52 : vector<1x32xf32>
    %cst_46 = arith.constant 9.99999974E-6 : f32
    %54 = vector.broadcast %cst_46 : f32 to vector<1x32xf32>
    %55 = arith.addf %53, %54 : vector<1x32xf32>
    %56 = math.rsqrt %55 : vector<1x32xf32>
    %57 = vector.broadcast %56 : vector<1x32xf32> to vector<32x32xf32>
    %58 = arith.mulf %48, %57 : vector<32x32xf32>
    %c0_47 = arith.constant 0 : index
    %c0_48 = arith.constant 0 : index
    %59 = vector.load %arg5[%c0_47, %c0_48] : memref<32x1xf32, #tpu.memory_space<vmem>>, vector<32x1xf32>
    %60 = vector.broadcast %59 : vector<32x1xf32> to vector<32x32xf32>
    %61 = arith.mulf %58, %60 : vector<32x32xf32>
    %c0_49 = arith.constant 0 : index
    %c0_50 = arith.constant 0 : index
    %62 = vector.load %arg6[%c0_49, %c0_50] : memref<32x1xf32, #tpu.memory_space<vmem>>, vector<32x1xf32>
    %63 = vector.broadcast %62 : vector<32x1xf32> to vector<32x32xf32>
    %64 = arith.addf %61, %63 : vector<32x32xf32>
    %65 = vector.broadcast %0 : vector<1x32xf32> to vector<32x32xf32>
    %66 = arith.mulf %64, %65 : vector<32x32xf32>
    %67 = vector.extract_strided_slice %66 {offsets = [0, 0], sizes = [32, 16], strides = [1, 1]} : vector<32x32xf32> to vector<32x16xf32>
    %c0_51 = arith.constant 0 : index
    %c0_52 = arith.constant 0 : index
    %c1_53 = arith.constant 1 : index
    %68 = vector.load %arg15[%c0_51, %c0_52, %c1_53] : memref<2x32x18xf32, #tpu.memory_space<vmem>>, vector<1x32x16xf32>
    %69 = vector.shape_cast %68 : vector<1x32x16xf32> to vector<32x16xf32>
    %70 = vector.shape_cast %67 : vector<32x16xf32> to vector<1x32x16xf32>
    tpu.vector_store %arg15[%c0_51, %c0_52, %c1_53], %70 {strides = array<i32>} : memref<2x32x18xf32, #tpu.memory_space<vmem>>, vector<1x32x16xf32>,
    %71 = vector.extract_strided_slice %66 {offsets = [0, 16], sizes = [32, 16], strides = [1, 1]} : vector<32x32xf32> to vector<32x16xf32>
    %c1_54 = arith.constant 1 : index
    %c0_55 = arith.constant 0 : index
    %c1_56 = arith.constant 1 : index
    %72 = vector.load %arg15[%c1_54, %c0_55, %c1_56] : memref<2x32x18xf32, #tpu.memory_space<vmem>>, vector<1x32x16xf32>
    %73 = vector.shape_cast %72 : vector<1x32x16xf32> to vector<32x16xf32>
    %74 = vector.shape_cast %71 : vector<32x16xf32> to vector<1x32x16xf32>
    tpu.vector_store %arg15[%c1_54, %c0_55, %c1_56], %74 {strides = array<i32>} : memref<2x32x18xf32, #tpu.memory_space<vmem>>, vector<1x32x16xf32>,
    %c0_57 = arith.constant 0 : index
    %c0_58 = arith.constant 0 : index
    %c0_59 = arith.constant 0 : index
    %75 = vector.load %arg15[%c0_57, %c0_58, %c0_59] : memref<2x32x18xf32, #tpu.memory_space<vmem>>, vector<1x32x16xf32>
    %76 = vector.shape_cast %75 : vector<1x32x16xf32> to vector<32x16xf32>
    %c0_60 = arith.constant 0 : index
    %c0_61 = arith.constant 0 : index
    %c1_62 = arith.constant 1 : index
    %77 = vector.load %arg15[%c0_60, %c0_61, %c1_62] : memref<2x32x18xf32, #tpu.memory_space<vmem>>, vector<1x32x16xf32>
    %78 = vector.shape_cast %77 : vector<1x32x16xf32> to vector<32x16xf32>
    %c0_63 = arith.constant 0 : index
    %c0_64 = arith.constant 0 : index
    %c2_65 = arith.constant 2 : index
    %79 = vector.load %arg15[%c0_63, %c0_64, %c2_65] : memref<2x32x18xf32, #tpu.memory_space<vmem>>, vector<1x32x16xf32>
    %80 = vector.shape_cast %79 : vector<1x32x16xf32> to vector<32x16xf32>
    %81 = tpu.concatenate %76, %78, %80 in 0 : vector<32x16xf32>, vector<32x16xf32>, vector<32x16xf32> -> vector<96x16xf32>
    %c1_66 = arith.constant 1 : index
    %c0_67 = arith.constant 0 : index
    %c0_68 = arith.constant 0 : index
    %82 = vector.load %arg15[%c1_66, %c0_67, %c0_68] : memref<2x32x18xf32, #tpu.memory_space<vmem>>, vector<1x32x16xf32>
    %83 = vector.shape_cast %82 : vector<1x32x16xf32> to vector<32x16xf32>
    %c1_69 = arith.constant 1 : index
    %c0_70 = arith.constant 0 : index
    %c1_71 = arith.constant 1 : index
    %84 = vector.load %arg15[%c1_69, %c0_70, %c1_71] : memref<2x32x18xf32, #tpu.memory_space<vmem>>, vector<1x32x16xf32>
    %85 = vector.shape_cast %84 : vector<1x32x16xf32> to vector<32x16xf32>
    %c1_72 = arith.constant 1 : index
    %c0_73 = arith.constant 0 : index
    %c2_74 = arith.constant 2 : index
    %86 = vector.load %arg15[%c1_72, %c0_73, %c2_74] : memref<2x32x18xf32, #tpu.memory_space<vmem>>, vector<1x32x16xf32>
    %87 = vector.shape_cast %86 : vector<1x32x16xf32> to vector<32x16xf32>
    %88 = tpu.concatenate %83, %85, %87 in 0 : vector<32x16xf32>, vector<32x16xf32>, vector<32x16xf32> -> vector<96x16xf32>
    %89 = tpu.concatenate %81, %88 in 1 : vector<96x16xf32>, vector<96x16xf32> -> vector<96x32xf32>
    %c0_75 = arith.constant 0 : index
    %c0_76 = arith.constant 0 : index
    %90 = vector.load %arg7[%c0_75, %c0_76] : memref<32x96xf32, #tpu.memory_space<vmem>>, vector<32x96xf32>
    %cst_77 = arith.constant dense<0.000000e+00> : vector<32x32xf32>
    %91 = tpu.matmul %90, %89, %cst_77 {dimension_numbers = #tpu.dot_dimension_numbers<[1], [0], [0], [1], [0, 0, 1, 1], [], []>} : vector<32x96xf32>, vector<96x32xf32>, vector<32x32xf32> -> vector<32x32xf32>
    %c0_78 = arith.constant 0 : index
    %c0_79 = arith.constant 0 : index
    %92 = vector.load %arg8[%c0_78, %c0_79] : memref<32x1xf32, #tpu.memory_space<vmem>>, vector<32x1xf32>
    %93 = vector.broadcast %92 : vector<32x1xf32> to vector<32x32xf32>
    %94 = arith.addf %91, %93 : vector<32x32xf32>
    %cst_80 = arith.constant 0.000000e+00 : f32
    %95 = vector.broadcast %cst_80 : f32 to vector<32x32xf32>
    %96 = arith.maximumf %94, %95 : vector<32x32xf32>
    %cst_81 = arith.constant dense<0.000000e+00> : vector<32xf32>
    %97 = vector.multi_reduction <add>, %96, %cst_81 [0] : vector<32x32xf32> to vector<32xf32>
    %98 = vector.shape_cast %97 : vector<32xf32> to vector<1x32xf32>
    %cst_82 = arith.constant 3.125000e-02 : f32
    %99 = vector.broadcast %cst_82 : f32 to vector<1x32xf32>
    %100 = arith.mulf %98, %99 : vector<1x32xf32>
    %101 = vector.broadcast %100 : vector<1x32xf32> to vector<32x32xf32>
    %102 = arith.subf %96, %101 : vector<32x32xf32>
    %103 = arith.mulf %102, %102 : vector<32x32xf32>
    %cst_83 = arith.constant dense<0.000000e+00> : vector<32xf32>
    %104 = vector.multi_reduction <add>, %103, %cst_83 [0] : vector<32x32xf32> to vector<32xf32>
    %105 = vector.shape_cast %104 : vector<32xf32> to vector<1x32xf32>
    %cst_84 = arith.constant 3.125000e-02 : f32
    %106 = vector.broadcast %cst_84 : f32 to vector<1x32xf32>
    %107 = arith.mulf %105, %106 : vector<1x32xf32>
    %cst_85 = arith.constant 9.99999974E-6 : f32
    %108 = vector.broadcast %cst_85 : f32 to vector<1x32xf32>
    %109 = arith.addf %107, %108 : vector<1x32xf32>
    %110 = math.rsqrt %109 : vector<1x32xf32>
    %111 = vector.broadcast %110 : vector<1x32xf32> to vector<32x32xf32>
    %112 = arith.mulf %102, %111 : vector<32x32xf32>
    %c0_86 = arith.constant 0 : index
    %c0_87 = arith.constant 0 : index
    %113 = vector.load %arg9[%c0_86, %c0_87] : memref<32x1xf32, #tpu.memory_space<vmem>>, vector<32x1xf32>
    %114 = vector.broadcast %113 : vector<32x1xf32> to vector<32x32xf32>
    %115 = arith.mulf %112, %114 : vector<32x32xf32>
    %c0_88 = arith.constant 0 : index
    %c0_89 = arith.constant 0 : index
    %116 = vector.load %arg10[%c0_88, %c0_89] : memref<32x1xf32, #tpu.memory_space<vmem>>, vector<32x1xf32>
    %117 = vector.broadcast %116 : vector<32x1xf32> to vector<32x32xf32>
    %118 = arith.addf %115, %117 : vector<32x32xf32>
    %119 = vector.broadcast %0 : vector<1x32xf32> to vector<32x32xf32>
    %120 = arith.mulf %118, %119 : vector<32x32xf32>
    %c0_90 = arith.constant 0 : index
    %c0_91 = arith.constant 0 : index
    %121 = vector.load %arg11[%c0_90, %c0_91] : memref<32x1xf32, #tpu.memory_space<vmem>>, vector<32x1xf32>
    %122 = vector.broadcast %121 : vector<32x1xf32> to vector<32x32xf32>
    %123 = arith.mulf %120, %122 : vector<32x32xf32>
    %cst_92 = arith.constant dense<0.000000e+00> : vector<32xf32>
    %124 = vector.multi_reduction <add>, %123, %cst_92 [0] : vector<32x32xf32> to vector<32xf32>
    %125 = vector.shape_cast %124 : vector<32xf32> to vector<1x32xf32>
    %c0_93 = arith.constant 0 : index
    %c0_94 = arith.constant 0 : index
    %126 = vector.load %arg12[%c0_93, %c0_94] : memref<1x1xf32, #tpu.memory_space<vmem>>, vector<1x1xf32>
    %127 = vector.broadcast %126 : vector<1x1xf32> to vector<1x32xf32>
    %128 = arith.addf %125, %127 : vector<1x32xf32>
    %129 = arith.mulf %128, %0 : vector<1x32xf32>
    %130 = vector.extract_strided_slice %129 {offsets = [0, 0], sizes = [1, 16], strides = [1, 1]} : vector<1x32xf32> to vector<1x16xf32>
    %c0_95 = arith.constant 0 : index
    %c0_96 = arith.constant 0 : index
    %c0_97 = arith.constant 0 : index
    %131 = vector.load %arg13[%c0_95, %c0_96, %c0_97] : memref<2x1x16xf32, #tpu.memory_space<vmem>>, vector<1x1x16xf32>
    %132 = vector.shape_cast %131 : vector<1x1x16xf32> to vector<1x16xf32>
    %133 = vector.shape_cast %130 : vector<1x16xf32> to vector<1x1x16xf32>
    tpu.vector_store %arg13[%c0_95, %c0_96, %c0_97], %133 {strides = array<i32>} : memref<2x1x16xf32, #tpu.memory_space<vmem>>, vector<1x1x16xf32>,
    %134 = vector.extract_strided_slice %129 {offsets = [0, 16], sizes = [1, 16], strides = [1, 1]} : vector<1x32xf32> to vector<1x16xf32>
    %c1_98 = arith.constant 1 : index
    %c0_99 = arith.constant 0 : index
    %c0_100 = arith.constant 0 : index
    %135 = vector.load %arg13[%c1_98, %c0_99, %c0_100] : memref<2x1x16xf32, #tpu.memory_space<vmem>>, vector<1x1x16xf32>
    %136 = vector.shape_cast %135 : vector<1x1x16xf32> to vector<1x16xf32>
    %137 = vector.shape_cast %134 : vector<1x16xf32> to vector<1x1x16xf32>
    tpu.vector_store %arg13[%c1_98, %c0_99, %c0_100], %137 {strides = array<i32>} : memref<2x1x16xf32, #tpu.memory_space<vmem>>, vector<1x1x16xf32>,
    return
  }
  func.func @transform_0(%arg0: i32) -> (i32, i32, i32) {
    %c0_i32 = arith.constant 0 : i32
    %c0_i32_0 = arith.constant 0 : i32
    %c0_i32_1 = arith.constant 0 : i32
    %c0_i32_2 = arith.constant 0 : i32
    return %c0_i32, %c0_i32_0, %c0_i32_1 : i32, i32, i32
  }
  func.func @transform_1(%arg0: i32) -> (i32, i32) {
    %c0_i32 = arith.constant 0 : i32
    %c0_i32_0 = arith.constant 0 : i32
    %c0_i32_1 = arith.constant 0 : i32
    return %c0_i32, %c0_i32_0 : i32, i32
  }
  func.func @transform_2(%arg0: i32) -> (i32, i32) {
    %c0_i32 = arith.constant 0 : i32
    %c0_i32_0 = arith.constant 0 : i32
    %c0_i32_1 = arith.constant 0 : i32
    return %c0_i32, %c0_i32_0 : i32, i32
  }
  func.func @transform_3(%arg0: i32) -> (i32, i32) {
    %c0_i32 = arith.constant 0 : i32
    %c0_i32_0 = arith.constant 0 : i32
    %c0_i32_1 = arith.constant 0 : i32
    return %c0_i32, %c0_i32_0 : i32, i32
  }
  func.func @transform_4(%arg0: i32) -> (i32, i32) {
    %c0_i32 = arith.constant 0 : i32
    %c0_i32_0 = arith.constant 0 : i32
    %c0_i32_1 = arith.constant 0 : i32
    return %c0_i32, %c0_i32_0 : i32, i32
  }
  func.func @transform_5(%arg0: i32) -> (i32, i32) {
    %c0_i32 = arith.constant 0 : i32
    %c0_i32_0 = arith.constant 0 : i32
    %c0_i32_1 = arith.constant 0 : i32
    return %c0_i32, %c0_i32_0 : i32, i32
  }
  func.func @transform_6(%arg0: i32) -> (i32, i32) {
    %c0_i32 = arith.constant 0 : i32
    %c0_i32_0 = arith.constant 0 : i32
    %c0_i32_1 = arith.constant 0 : i32
    return %c0_i32, %c0_i32_0 : i32, i32
  }
  func.func @transform_7(%arg0: i32) -> (i32, i32) {
    %c0_i32 = arith.constant 0 : i32
    %c0_i32_0 = arith.constant 0 : i32
    %c0_i32_1 = arith.constant 0 : i32
    return %c0_i32, %c0_i32_0 : i32, i32
  }
  func.func @transform_8(%arg0: i32) -> (i32, i32) {
    %c0_i32 = arith.constant 0 : i32
    %c0_i32_0 = arith.constant 0 : i32
    %c0_i32_1 = arith.constant 0 : i32
    return %c0_i32, %c0_i32_0 : i32, i32
  }
  func.func @transform_9(%arg0: i32) -> (i32, i32) {
    %c0_i32 = arith.constant 0 : i32
    %c0_i32_0 = arith.constant 0 : i32
    %c0_i32_1 = arith.constant 0 : i32
    return %c0_i32, %c0_i32_0 : i32, i32
  }
  func.func @transform_10(%arg0: i32) -> (i32, i32) {
    %c0_i32 = arith.constant 0 : i32
    %c0_i32_0 = arith.constant 0 : i32
    %c0_i32_1 = arith.constant 0 : i32
    return %c0_i32, %c0_i32_0 : i32, i32
  }
  func.func @transform_11(%arg0: i32) -> (i32, i32) {
    %c0_i32 = arith.constant 0 : i32
    %c0_i32_0 = arith.constant 0 : i32
    %c0_i32_1 = arith.constant 0 : i32
    return %c0_i32, %c0_i32_0 : i32, i32
  }
  func.func @transform_12(%arg0: i32) -> (i32, i32, i32) {
    %c0_i32 = arith.constant 0 : i32
    %c0_i32_0 = arith.constant 0 : i32
    %c0_i32_1 = arith.constant 0 : i32
    %c0_i32_2 = arith.constant 0 : i32
    return %c0_i32, %c0_i32_0, %c0_i32_1 : i32, i32, i32
  }
}

</mosaic_0001>

<bundles_post_ra>
// kernel: tpu_custom_call.1
= control target key start
LH: loop header
LB: loop body
LE: loop exit
PB: predicated region body
PF: predicated region fallthrough
CT: control target
= control target key end

     0   :  { %s1330_s0 = inlined_call_operand.vmem [shape: f32[2,16,16], index: 0, kind: input, shape index: {}]   ;;  %s1331_s1 = inlined_call_operand.vmem [shape: f32[1,32], index: 1, kind: input, shape index: {}]   ;;  %s1332_s2 = inlined_call_operand.vmem [shape: f32[32,48], index: 2, kind: input, shape index: {}]   ;;  %s1333_s3 = inlined_call_operand.vmem [shape: f32[32,1], index: 3, kind: input, shape index: {}]   ;;  %s1334_s4 = inlined_call_operand.vmem [shape: f32[32,1], index: 4, kind: input, shape index: {}]   ;;  %s1335_s5 = inlined_call_operand.vmem [shape: f32[32,1], index: 5, kind: input, shape index: {}]   ;;  %s1336_s6 = inlined_call_operand.vmem [shape: f32[32,96], index: 6, kind: input, shape index: {}]   ;;  %s1337_s7 = inlined_call_operand.vmem [shape: f32[32,1], index: 7, kind: input, shape index: {}]   ;;  %s1338_s8 = inlined_call_operand.vmem [shape: f32[32,1], index: 8, kind: input, shape index: {}]   ;;  %s1339_s9 = inlined_call_operand.vmem [shape: f32[32,1], index: 9, kind: input, shape index: {}]   ;;  %s1340_s10 = inlined_call_operand.vmem [shape: f32[32,1], index: 10, kind: input, shape index: {}]   ;;  %s1341_s11 = inlined_call_operand.<no memory space> [shape: f32[1,1], index: 11, kind: input, shape index: {}]   ;;  %s1342_s12 = inlined_call_operand.hbm [shape: f32[2,1,16], index: 12, kind: output, shape index: {}]  }
   0x1   :  { %v17_v0 = vstv %s1341_s11 }
   0x2   :  { %18 = vst [vmem:[#allocation4] sm:$0x1] %v17_v0 }
   0x3   :  { %v61_v1 = vlaneseq  ;;  %vm45_vm0 = vcmask 146432   ;;  %v955_v3 = vmov 0.0  }
   0x4   :  { %49 = vst.msk [vmem:[#allocation2 + $0x18] sm:$0xff] %vm45_vm0, %v955_v3  ;;  %46 = vst.msk [vmem:[#allocation2] sm:$0xff] %vm45_vm0, %v955_v3 }
   0x5   :  { %v1032_v2 = vshrl.u32 %v61_v1, 7  ;;  %47 = vst.msk [vmem:[#allocation2 + $0x8] sm:$0xff] %vm45_vm0, %v955_v3  ;;  %48 = vst.msk [vmem:[#allocation2 + $0x10] sm:$0xff] %vm45_vm0, %v955_v3 }
   0x6   :  { %50 = vst.msk [vmem:[#allocation3] sm:$0xff] %vm45_vm0, %v955_v3  ;;  %51 = vst.msk [vmem:[#allocation3 + $0x8] sm:$0xff] %vm45_vm0, %v955_v3 }
   0x7   :  { %52 = vst.msk [vmem:[#allocation3 + $0x10] sm:$0xff] %vm45_vm0, %v955_v3  ;;  %53 = vst.msk [vmem:[#allocation3 + $0x18] sm:$0xff] %vm45_vm0, %v955_v3 }
   0x8   :  { %54 = vst.msk [vmem:[#allocation3 + $0x20] sm:$0xff] %vm45_vm0, %v955_v3  ;;  %55 = vst.msk [vmem:[#allocation3 + $0x28] sm:$0xff] %vm45_vm0, %v955_v3 }
   0x9   :  { %56 = vst.msk [vmem:[#allocation3 + $0x30] sm:$0xff] %vm45_vm0, %v955_v3  ;;  %57 = vst.msk [vmem:[#allocation3 + $0x38] sm:$0xff] %vm45_vm0, %v955_v3 }
   0xa   :  { %19 = vsyncpa [#allocation6], 0  ;;  %v1037_v4 = vld [vmem:[%s1331_s1] sm:$0x1]  ;;  %v63_v5 = vsub.s32 0, %v1032_v2  ;;  %s956_s24 = smov 112  }
   0xb   :  { %v835_v7 = vld [vmem:[%s1330_s0 + $0x18] sm:$0xff]  ;;  %v834_v8 = vld [vmem:[%s1330_s0 + $0x10] sm:$0xff]  ;;  %v59_v10 = vld [vmem:[%s1330_s0 + $0x8] sm:$0xff]  ;;  %s957_s14 = smov 1   ;;  %vm76_vm1 = vcmask 138248   ;;  %s959_s15 = smov 127  }
   0xc   :  { %v1043_v6 = vrot.slane %v1037_v4, %v63_v5  ;;  %v58_v11 = vld [vmem:[%s1330_s0] sm:$0xff]  ;;  %s958_s0 = smov 126   ;;  %s960_s16 = smov 16   ;;  %vm179_vm2 = vcmask 392192   ;;  %v961_v30 = vmov 0   ;;  %v157_v31 = vld [vmem:[%s1333_s3 + $0x10] sm:$0xff] }
   0xd   :  { %v151_v26 = vld [vmem:[%s1332_s2] sm:$0xff]  ;;  %927 = vset.pattern.permute.xlu1 %v961_v30  ;;  %928 = vset.pattern.permute.xlu0 %v961_v30  ;;  %v158_v32 = vld [vmem:[%s1333_s3 + $0x18] sm:$0xff]  ;;  %v156_v33 = vld [vmem:[%s1333_s3 + $0x8] sm:$0xff]  ;;  %vm144_vm3 = vcmask 130048   ;;  %vm281_vm4 = vcmask 261120   ;;  %vm553_vm5 = vcmask 785408  }
   0xe   :  { %82 = vrot.lane.b32.xlu0 %v1043_v6, %s956_s24  ;;  %v67_v14 = vmul.f32 %v1043_v6, %v59_v10  ;;  %v66_v15 = vmul.f32 %v1043_v6, %v58_v11  ;;  %882 = vmatprep.mubr.msk.f32.mxu0 %vm179_vm2, %v151_v26  ;;  %v155_v28 = vld [vmem:[%s1333_s3] sm:$0xff]  ;;  %v326_v34 = vld [vmem:[%s1334_s4 + $0x10] sm:$0xff]  ;;  %v327_v35 = vld [vmem:[%s1334_s4 + $0x18] sm:$0xff]  ;;  %vm810_vm6 = vcmask 122880  }
   0xf   :  { %v325_v36 = vld [vmem:[%s1334_s4 + $0x8] sm:$0xff]  ;;  %v355_v37 = vld [vmem:[%s1335_s5 + $0x18] sm:$0xff]  ;;  %v324_v38 = vld [vmem:[%s1334_s4] sm:$0xff] }
  0x10   :  { %v354_v39 = vld [vmem:[%s1335_s5 + $0x10] sm:$0xff]  ;;  %v352_v40 = vld [vmem:[%s1335_s5] sm:$0xff]  ;;  %v353_v41 = vld [vmem:[%s1335_s5 + $0x8] sm:$0xff] }
  0x11   :  { %v152_v58 = vld [vmem:[%s1332_s2 + $0x8] sm:$0xff]  ;;  %v153_v59 = vld [vmem:[%s1332_s2 + $0x10] sm:$0xff]  ;;  %v154_v60 = vld [vmem:[%s1332_s2 + $0x18] sm:$0xff]  ;;  %s962_s2 = smov 113  }
  0x80   :  { %v83_v9 = vpop.permute.xlu0 %82 }
  0x81   :  { %v86_v12 = vmul.f32 %v835_v7, %v83_v9  ;;  %v85_v13 = vmul.f32 %v834_v8, %v83_v9 }
  0x83   :  { %91 = vrot.lane.b32.xlu0 %v86_v12, %s957_s14  ;;  %89 = vrot.lane.b32.xlu1 %v85_v13, %s957_s14 }
  0x87   :  { %72 = vrot.lane.b32.xlu1 %v67_v14, %s957_s14  ;;  %70 = vrot.lane.b32.xlu0 %v66_v15, %s957_s14 }
  0xf5   :  { %v92_v16 = vpop.permute.xlu0 %91  ;;  %v90_v17 = vpop.permute.xlu1 %89 }
  0xf6   :  { %97 = vst.msk [vmem:[#allocation2 + $0x18] sm:$0xff] %vm76_vm1, %v92_v16  ;;  %96 = vst.msk [vmem:[#allocation2 + $0x10] sm:$0xff] %vm76_vm1, %v90_v17 }
  0xf9   :  { %v73_v18 = vpop.permute.xlu1 %72  ;;  %v71_v19 = vpop.permute.xlu0 %70 }
  0xfa   :  { %78 = vst.msk [vmem:[#allocation2 + $0x8] sm:$0xff] %vm76_vm1, %v73_v18  ;;  %77 = vst.msk [vmem:[#allocation2] sm:$0xff] %vm76_vm1, %v71_v19 }
  0xfd   :  { %v115_v20 = vld [vmem:[#allocation2 + $0x18] sm:$0xff]  ;;  %v114_v21 = vld [vmem:[#allocation2 + $0x10] sm:$0xff] }
  0xfe   :  { %124 = vrot.lane.b32.xlu1 %v115_v20, %s958_s0  ;;  %122 = vrot.lane.b32.xlu0 %v114_v21, %s958_s0 }
 0x101   :  { %v1073_v22 = vld [vmem:[#allocation2 + $0x8] sm:$0xff]  ;;  %v1077_v23 = vld [vmem:[#allocation2] sm:$0xff] }
 0x102   :  { %120 = vrot.lane.b32.xlu1 %v115_v20, %s959_s15  ;;  %118 = vrot.lane.b32.xlu0 %v114_v21, %s959_s15 }
 0x106   :  { %110 = vrot.lane.b32.xlu1 %v1073_v22, %s958_s0 }
 0x10a   :  { %108 = vrot.lane.b32.xlu1 %v1077_v23, %s958_s0 }
 0x10e   :  { %104 = vrot.lane.b32.xlu1 %v1073_v22, %s959_s15 }
 0x112   :  { %102 = vrot.lane.b32.xlu1 %v1077_v23, %s959_s15 }
 0x116   :  { %128 = vrot.lane.b32.xlu1 %v115_v20, %s960_s16 }
 0x11a   :  { %161 = vperm.xlu1 %927, %v155_v28  }
 0x11e   :  { %171 = vperm.xlu1 %927, %v157_v31  }
 0x122   :  { %176 = vperm.xlu1 %927, %v158_v32  }
 0x126   :  { %340 = vperm.xlu1 %927, %v326_v34  }
 0x12a   :  { %335 = vperm.xlu1 %927, %v325_v36  }
 0x12e   :  { %330 = vperm.xlu1 %927, %v324_v38  }
 0x132   :  { %358 = vperm.xlu1 %927, %v352_v40  }
 0x170   :  { %v125_v24 = vpop.permute.xlu1 %124  ;;  %v123_v25 = vpop.permute.xlu0 %122 }
 0x171   :  { %136 = vrot.lane.b32.xlu0 %v125_v24, %s960_s16 }
 0x174   :  { %v121_v27 = vpop.permute.xlu1 %120  ;;  %v119_v29 = vpop.permute.xlu0 %118 }
 0x175   :  { %134 = vrot.lane.b32.xlu0 %v123_v25, %s960_s16 }
 0x178   :  { %v111_v42 = vpop.permute.xlu1 %110 }
 0x179   :  { %132 = vrot.lane.b32.xlu0 %v121_v27, %s960_s16 }
 0x17c   :  { %v109_v43 = vpop.permute.xlu1 %108 }
 0x17d   :  { %130 = vrot.lane.b32.xlu0 %v119_v29, %s960_s16 }
 0x180   :  { %v105_v44 = vpop.permute.xlu1 %104 }
 0x181   :  { %126 = vrot.lane.b32.xlu0 %v114_v21, %s960_s16 }
 0x184   :  { %v103_v49 = vpop.permute.xlu1 %102 }
 0x185   :  { %166 = vperm.xlu0 %928, %v156_v33  }
 0x188   :  { %v129_v52 = vpop.permute.xlu1 %128 }
 0x189   :  { %345 = vperm.xlu0 %928, %v327_v35   ;;  %v146_v55 = vsel %vm144_vm3, %v1073_v22, %v129_v52 }
 0x18d   :  { %373 = vperm.xlu0 %928, %v355_v37  }
 0x191   :  { %368 = vperm.xlu0 %928, %v354_v39  }
 0x195   :  { %363 = vperm.xlu0 %928, %v353_v41   ;;  %v162_v61 = vpop.permute.xlu1 %161 }
 0x199   :  { %v172_v62 = vpop.permute.xlu1 %171 }
 0x19d   :  { %v177_v8 = vpop.permute.xlu1 %176 }
 0x1e3   :  { %v137_v45 = vpop.permute.xlu0 %136 }
 0x1e4   :  { %v150_v46 = vsel %vm144_vm3, %v111_v42, %v137_v45 }
 0x1e5   :  { %870 = vmatprep.subr.mxu0 %v150_v46 }
 0x1e6   :  { %871 = vmatpush3.msra.mxu0 %v150_v46 }
 0x1e7   :  { %v135_v47 = vpop.permute.xlu0 %134 }
 0x1e8   :  { %v149_v48 = vsel %vm144_vm3, %v109_v43, %v135_v47 }
 0x1e9   :  { %872 = vmatprep.subr.mxu0 %v149_v48 }
 0x1ea   :  { %873 = vmatpush3.msra.mxu0 %v149_v48 }
 0x1eb   :  { %v133_v50 = vpop.permute.xlu0 %132 }
 0x1ec   :  { %v148_v51 = vsel %vm144_vm3, %v105_v44, %v133_v50 }
 0x1ed   :  { %874 = vmatprep.subr.mxu0 %v148_v51 }
 0x1ee   :  { %875 = vmatpush3.msra.mxu0 %v148_v51 }
 0x1ef   :  { %v131_v53 = vpop.permute.xlu0 %130 }
 0x1f0   :  { %v147_v54 = vsel %vm144_vm3, %v103_v49, %v131_v53 }
 0x1f1   :  { %876 = vmatprep.subr.mxu0 %v147_v54 }
 0x1f2   :  { %877 = vmatpush3.msra.mxu0 %v147_v54  ;;  %v341_v54 = vpop.permute.xlu1 %340 }
 0x1f3   :  { %878 = vmatprep.subr.mxu0 %v146_v55  ;;  %v127_v56 = vpop.permute.xlu0 %126 }
 0x1f4   :  { %879 = vmatpush3.msra.mxu0 %v146_v55  ;;  %v145_v57 = vsel %vm144_vm3, %v1077_v23, %v127_v56 }
 0x1f5   :  { %880 = vmatprep.subr.mxu0 %v145_v57 }
 0x1f6   :  { %881 = vmatpush3.msra.mxu0 %v145_v57  ;;  %v336_v56 = vpop.permute.xlu1 %335 }
 0x1f7   :  { %883 = vmatmul.mubr.msk.f32.vlgmr.msra.gmra.mxu0 %vm179_vm2, %v152_v58 }
 0x1f8   :  { %885 = vmatprep.mubr.msk.f32.mxu0 %vm179_vm2, %v153_v59 }
 0x1fa   :  { %v331_v59 = vpop.permute.xlu1 %330 }
 0x1fb   :  { %886 = vmatmul.mubr.msk.f32.gmra.mxu0 %vm179_vm2, %v154_v60 }
 0x200   :  { %v167_v63 = vpop.permute.xlu0 %166 }
 0x204   :  { %v346_v55 = vpop.permute.xlu0 %345 }
 0x208   :  { %v374_v57 = vpop.permute.xlu0 %373 }
 0x20c   :  { %v369_v60 = vpop.permute.xlu0 %368 }
 0x2b7   :  { %v884_v0 = vpop.f32.mrf.mxu0 }
 0x2b8   :  { %v264_v1 = vadd.f32 %v884_v0, %v167_v63 }
 0x2b9   :  { %v258_v3 = vpop.f32.mrf.mxu0 }
 0x2ba   :  { %v259_v7 = vadd.f32 %v258_v3, %v162_v61  ;;  %v278_v10 = vmax.f32 %v264_v1, 0.0 }
 0x2bb   :  { %v887_v9 = vpop.f32.mrf.mxu0 }
 0x2bc   :  { %v277_v11 = vmax.f32 %v259_v7, 0.0  ;;  %v274_v12 = vadd.f32 %v887_v9, %v177_v8  ;;  %v283_v16 = vsel %vm281_vm4, %v278_v10, 0.0 }
 0x2bd   :  { %v268_v13 = vpop.f32.mrf.mxu0 }
 0x2be   :  { %v282_v14 = vsel %vm281_vm4, %v277_v11, 0.0  ;;  %v269_v15 = vadd.f32 %v268_v13, %v172_v62  ;;  %v280_v17 = vmax.f32 %v274_v12, 0.0  ;;  %v364_v12 = vpop.permute.xlu0 %363 }
 0x2bf   :  { %v284_v19 = vadd.f32 %v283_v16, %v282_v14 }
 0x2c0   :  { %v279_v18 = vmax.f32 %v269_v15, 0.0  ;;  %v287_v22 = vsel %vm281_vm4, %v280_v17, 0.0 }
 0x2c2   :  { %v285_v20 = vsel %vm281_vm4, %v279_v18, 0.0 }
 0x2c3   :  { %v286_v21 = vadd.f32 %v285_v20, %v284_v19 }
 0x2c5   :  { %v288_v23 = vadd.f32 %v287_v22, %v286_v21 }
 0x2c7   :  { %v289_v24 = vrot.slane %v288_v23, 4 }
 0x2c9   :  { %v290_v25 = vadd.f32 %v289_v24, %v288_v23 }
 0x2cb   :  { %v291_v26 = vrot.slane %v290_v25, 2 }
 0x2cd   :  { %v292_v27 = vadd.f32 %v291_v26, %v290_v25 }
 0x2cf   :  { %v293_v28 = vrot.slane %v292_v27, 1 }
 0x2d1   :  { %v294_v29 = vadd.f32 %v293_v28, %v292_v27 }
 0x2d3   :  { %v295_v30 = vmul.f32 0.03125, %v294_v29 }
 0x2d5   :  { %v296_v31 = vsub.f32 %v277_v11, %v295_v30  ;;  %v297_v32 = vsub.f32 %v278_v10, %v295_v30  ;;  %v298_v33 = vsub.f32 %v279_v18, %v295_v30  ;;  %v299_v34 = vsub.f32 %v280_v17, %v295_v30  ;;  %v359_v11 = vpop.permute.xlu1 %358 }
 0x2d7   :  { %v300_v35 = vmul.f32 %v296_v31, %v296_v31  ;;  %v301_v36 = vmul.f32 %v297_v32, %v297_v32  ;;  %v302_v37 = vmul.f32 %v298_v33, %v298_v33  ;;  %v303_v38 = vmul.f32 %v299_v34, %v299_v34 }
 0x2d9   :  { %v304_v39 = vsel %vm281_vm4, %v300_v35, 0.0  ;;  %v305_v40 = vsel %vm281_vm4, %v301_v36, 0.0  ;;  %v307_v42 = vsel %vm281_vm4, %v302_v37, 0.0  ;;  %v309_v44 = vsel %vm281_vm4, %v303_v38, 0.0  ;;  %v529_v35 = vld [vmem:[%s1337_s7] sm:$0xff]  ;;  %v531_v36 = vld [vmem:[%s1337_s7 + $0x10] sm:$0xff] }
 0x2da   :  { %v306_v41 = vadd.f32 %v305_v40, %v304_v39  ;;  %v697_v37 = vld [vmem:[%s1338_s8] sm:$0xff]  ;;  %v699_v38 = vld [vmem:[%s1338_s8 + $0x10] sm:$0xff]  ;;  %v726_v39 = vld [vmem:[%s1339_s9 + $0x8] sm:$0xff] }
 0x2db   :  { %v727_v40 = vld [vmem:[%s1339_s9 + $0x10] sm:$0xff] }
 0x2dc   :  { %v308_v43 = vadd.f32 %v307_v42, %v306_v41  ;;  %v757_v41 = vld [vmem:[%s1340_s10] sm:$0xff]  ;;  %v759_v42 = vld [vmem:[%s1340_s10 + $0x10] sm:$0xff] }
 0x2de   :  { %v310_v45 = vadd.f32 %v309_v44, %v308_v43  ;;  %v798_v43 = vld [vmem:[#allocation4] sm:$0x1] }
 0x2e0   :  { %v311_v46 = vrot.slane %v310_v45, 4 }
 0x2e2   :  { %v312_v47 = vadd.f32 %v311_v46, %v310_v45 }
 0x2e4   :  { %v313_v48 = vrot.slane %v312_v47, 2 }
 0x2e6   :  { %v314_v49 = vadd.f32 %v313_v48, %v312_v47 }
 0x2e8   :  { %v315_v50 = vrot.slane %v314_v49, 1 }
 0x2ea   :  { %v316_v51 = vadd.f32 %v315_v50, %v314_v49 }
 0x2ec   :  { %v317_v52 = vmul.f32 0.03125, %v316_v51  ;;  %v525_v51 = vld [vmem:[%s1336_s6] sm:$0xff] }
 0x2ed   :  { %912 = vmatprep.mubr.msk.f32.mxu1 %vm553_vm5, %v525_v51 }
 0x2ee   :  { %v318_v53 = vadd.f32 1e-05, %v317_v52 }
 0x2f0   :  { %929 = vrsqrt.f32 %v318_v53  ;;  %v530_v53 = vld [vmem:[%s1337_s7 + $0x8] sm:$0xff] }
 0x2fd   :  { %v930_v58 = vpop.eup %929 }
 0x2fe   :  { %v322_v61 = vmul.f32 %v930_v58, %v298_v33  ;;  %v323_v62 = vmul.f32 %v930_v58, %v299_v34  ;;  %v320_v63 = vmul.f32 %v930_v58, %v296_v31  ;;  %v321_v0 = vmul.f32 %v930_v58, %v297_v32  ;;  %v728_v58 = vld [vmem:[%s1339_s9 + $0x18] sm:$0xff] }
 0x300   :  { %v350_v1 = vmul.f32 %v341_v54, %v322_v61  ;;  %v351_v3 = vmul.f32 %v346_v55, %v323_v62  ;;  %v348_v7 = vmul.f32 %v331_v59, %v320_v63  ;;  %v349_v8 = vmul.f32 %v336_v56, %v321_v0  ;;  %v532_v54 = vld [vmem:[%s1337_s7 + $0x18] sm:$0xff]  ;;  %v698_v55 = vld [vmem:[%s1338_s8 + $0x8] sm:$0xff]  ;;  %v725_v56 = vld [vmem:[%s1339_s9] sm:$0xff] }
 0x301   :  { %v758_v59 = vld [vmem:[%s1340_s10 + $0x8] sm:$0xff] }
 0x302   :  { %v379_v9 = vadd.f32 %v374_v57, %v351_v3  ;;  %v378_v10 = vadd.f32 %v369_v60, %v350_v1  ;;  %v376_v15 = vadd.f32 %v359_v11, %v348_v7  ;;  %v377_v16 = vadd.f32 %v364_v12, %v349_v8  ;;  %v700_v57 = vld [vmem:[%s1338_s8 + $0x18] sm:$0xff] }
 0x303   :  { %v760_v60 = vld [vmem:[%s1340_s10 + $0x18] sm:$0xff] }
 0x304   :  { %v383_v13 = vmul.f32 %v379_v9, %v1043_v6  ;;  %v382_v14 = vmul.f32 %v378_v10, %v1043_v6  ;;  %v380_v17 = vmul.f32 %v376_v15, %v1043_v6  ;;  %v381_v18 = vmul.f32 %v377_v16, %v1043_v6 }
 0x306   :  { %410 = vrot.lane.b32.xlu0 %v383_v13, %s962_s2  ;;  %408 = vrot.lane.b32.xlu1 %v382_v14, %s962_s2 }
 0x30a   :  { %404 = vrot.lane.b32.xlu1 %v380_v17, %s962_s2  ;;  %406 = vrot.lane.b32.xlu0 %v381_v18, %s962_s2 }
 0x30e   :  { %392 = vrot.lane.b32.xlu1 %v382_v14, %s957_s14  ;;  %394 = vrot.lane.b32.xlu0 %v383_v13, %s957_s14 }
 0x312   :  { %388 = vrot.lane.b32.xlu1 %v380_v17, %s957_s14  ;;  %390 = vrot.lane.b32.xlu0 %v381_v18, %s957_s14 }
 0x378   :  { %v409_v19 = vpop.permute.xlu1 %408  ;;  %v411_v20 = vpop.permute.xlu0 %410 }
 0x379   :  { %419 = vst.msk [vmem:[#allocation3 + $0x30] sm:$0xff] %vm76_vm1, %v409_v19  ;;  %420 = vst.msk [vmem:[#allocation3 + $0x38] sm:$0xff] %vm76_vm1, %v411_v20 }
 0x37c   :  { %v405_v21 = vpop.permute.xlu1 %404  ;;  %v407_v22 = vpop.permute.xlu0 %406 }
 0x37d   :  { %417 = vst.msk [vmem:[#allocation3 + $0x20] sm:$0xff] %vm76_vm1, %v405_v21  ;;  %418 = vst.msk [vmem:[#allocation3 + $0x28] sm:$0xff] %vm76_vm1, %v407_v22 }
 0x380   :  { %v393_v23 = vpop.permute.xlu1 %392  ;;  %v395_v24 = vpop.permute.xlu0 %394  ;;  %v1171_v25 = vld [vmem:[#allocation3 + $0x30] sm:$0xff]  ;;  %v456_v26 = vld [vmem:[#allocation3 + $0x38] sm:$0xff] }
 0x381   :  { %402 = vst.msk [vmem:[#allocation3 + $0x10] sm:$0xff] %vm76_vm1, %v393_v23  ;;  %403 = vst.msk [vmem:[#allocation3 + $0x18] sm:$0xff] %vm76_vm1, %v395_v24  ;;  %473 = vrot.lane.b32.xlu1 %v1171_v25, %s958_s0  ;;  %475 = vrot.lane.b32.xlu0 %v456_v26, %s958_s0 }
 0x384   :  { %v389_v27 = vpop.permute.xlu1 %388  ;;  %v391_v28 = vpop.permute.xlu0 %390  ;;  %v453_v29 = vld [vmem:[#allocation3 + $0x20] sm:$0xff]  ;;  %v454_v30 = vld [vmem:[#allocation3 + $0x28] sm:$0xff] }
 0x385   :  { %400 = vst.msk [vmem:[#allocation3] sm:$0xff] %vm76_vm1, %v389_v27  ;;  %401 = vst.msk [vmem:[#allocation3 + $0x8] sm:$0xff] %vm76_vm1, %v391_v28  ;;  %469 = vrot.lane.b32.xlu1 %v453_v29, %s958_s0  ;;  %471 = vrot.lane.b32.xlu0 %v454_v30, %s958_s0 }
 0x388   :  { %v1187_v31 = vld [vmem:[#allocation3 + $0x18] sm:$0xff]  ;;  %v1191_v32 = vld [vmem:[#allocation3 + $0x10] sm:$0xff] }
 0x389   :  { %465 = vrot.lane.b32.xlu1 %v1171_v25, %s959_s15  ;;  %467 = vrot.lane.b32.xlu0 %v456_v26, %s959_s15 }
 0x38c   :  { %v1195_v33 = vld [vmem:[#allocation3 + $0x8] sm:$0xff]  ;;  %v1199_v34 = vld [vmem:[#allocation3] sm:$0xff] }
 0x38d   :  { %461 = vrot.lane.b32.xlu1 %v453_v29, %s959_s15  ;;  %463 = vrot.lane.b32.xlu0 %v454_v30, %s959_s15 }
 0x391   :  { %447 = vrot.lane.b32.xlu0 %v1187_v31, %s958_s0 }
 0x395   :  { %445 = vrot.lane.b32.xlu0 %v1191_v32, %s958_s0 }
 0x399   :  { %443 = vrot.lane.b32.xlu0 %v1195_v33, %s958_s0 }
 0x39d   :  { %441 = vrot.lane.b32.xlu0 %v1199_v34, %s958_s0 }
 0x3a1   :  { %435 = vrot.lane.b32.xlu0 %v1187_v31, %s959_s15 }
 0x3a5   :  { %433 = vrot.lane.b32.xlu0 %v1191_v32, %s959_s15 }
 0x3a9   :  { %431 = vrot.lane.b32.xlu0 %v1195_v33, %s959_s15 }
 0x3ad   :  { %429 = vrot.lane.b32.xlu0 %v1199_v34, %s959_s15 }
 0x3b1   :  { %483 = vrot.lane.b32.xlu0 %v456_v26, %s960_s16 }
 0x3b5   :  { %479 = vrot.lane.b32.xlu0 %v454_v30, %s960_s16 }
 0x3b9   :  { %535 = vperm.xlu0 %928, %v529_v35  }
 0x3bd   :  { %545 = vperm.xlu0 %928, %v531_v36  }
 0x3c1   :  { %703 = vperm.xlu0 %928, %v697_v37  }
 0x3c5   :  { %713 = vperm.xlu0 %928, %v699_v38  }
 0x3c9   :  { %736 = vperm.xlu0 %928, %v726_v39  }
 0x3cd   :  { %741 = vperm.xlu0 %928, %v727_v40  }
 0x3d1   :  { %763 = vperm.xlu0 %928, %v757_v41  }
 0x3d5   :  { %773 = vperm.xlu0 %928, %v759_v42  }
 0x3d9   :  { %801 = vperm.xlu0 %928, %v798_v43  }
 0x3f3   :  { %v476_v44 = vpop.permute.xlu0 %475  ;;  %v474_v45 = vpop.permute.xlu1 %473 }
 0x3f4   :  { %499 = vrot.lane.b32.xlu1 %v476_v44, %s960_s16 }
 0x3f7   :  { %v472_v46 = vpop.permute.xlu0 %471  ;;  %v470_v47 = vpop.permute.xlu1 %469 }
 0x3f8   :  { %497 = vrot.lane.b32.xlu1 %v474_v45, %s960_s16 }
 0x3fb   :  { %v468_v48 = vpop.permute.xlu0 %467  ;;  %v466_v49 = vpop.permute.xlu1 %465 }
 0x3fc   :  { %495 = vrot.lane.b32.xlu1 %v472_v46, %s960_s16 }
 0x3ff   :  { %v464_v50 = vpop.permute.xlu0 %463  ;;  %v462_v52 = vpop.permute.xlu1 %461 }
 0x400   :  { %493 = vrot.lane.b32.xlu1 %v470_v47, %s960_s16 }
 0x403   :  { %v448_v61 = vpop.permute.xlu0 %447 }
 0x404   :  { %491 = vrot.lane.b32.xlu1 %v468_v48, %s960_s16 }
 0x407   :  { %v446_v62 = vpop.permute.xlu0 %445 }
 0x408   :  { %489 = vrot.lane.b32.xlu1 %v466_v49, %s960_s16 }
 0x40b   :  { %v444_v63 = vpop.permute.xlu0 %443 }
 0x40c   :  { %487 = vrot.lane.b32.xlu1 %v464_v50, %s960_s16 }
 0x40f   :  { %v442_v0 = vpop.permute.xlu0 %441 }
 0x410   :  { %485 = vrot.lane.b32.xlu1 %v462_v52, %s960_s16 }
 0x413   :  { %v436_v7 = vpop.permute.xlu0 %435 }
 0x414   :  { %481 = vrot.lane.b32.xlu1 %v1171_v25, %s960_s16 }
 0x417   :  { %v434_v10 = vpop.permute.xlu0 %433 }
 0x418   :  { %477 = vrot.lane.b32.xlu1 %v453_v29, %s960_s16 }
 0x41b   :  { %v432_v15 = vpop.permute.xlu0 %431 }
 0x41c   :  { %540 = vperm.xlu1 %927, %v530_v53  }
 0x41f   :  { %v430_v18 = vpop.permute.xlu0 %429 }
 0x420   :  { %550 = vperm.xlu1 %927, %v532_v54  }
 0x423   :  { %v484_v23 = vpop.permute.xlu0 %483 }
 0x424   :  { %708 = vperm.xlu1 %927, %v698_v55   ;;  %v516_v26 = vsel %vm144_vm3, %v1187_v31, %v484_v23  ;;  %v526_v31 = vld [vmem:[%s1336_s6 + $0x8] sm:$0xff] }
 0x427   :  { %v480_v27 = vpop.permute.xlu0 %479 }
 0x428   :  { %731 = vperm.xlu1 %927, %v725_v56   ;;  %v514_v30 = vsel %vm144_vm3, %v1195_v33, %v480_v27  ;;  %v528_v33 = vld [vmem:[%s1336_s6 + $0x18] sm:$0xff] }
 0x42c   :  { %718 = vperm.xlu1 %927, %v700_v57  }
 0x430   :  { %746 = vperm.xlu1 %927, %v728_v58  }
 0x434   :  { %768 = vperm.xlu1 %927, %v758_v59   ;;  %v536_v37 = vpop.permute.xlu0 %535 }
 0x438   :  { %778 = vperm.xlu1 %927, %v760_v60   ;;  %v546_v47 = vpop.permute.xlu0 %545 }
 0x466   :  { %v500_v1 = vpop.permute.xlu1 %499 }
 0x467   :  { %v524_v3 = vsel %vm144_vm3, %v448_v61, %v500_v1 }
 0x468   :  { %888 = vmatprep.subr.mxu1 %v524_v3 }
 0x469   :  { %889 = vmatpush3.msra.mxu1 %v524_v3 }
 0x46a   :  { %v498_v8 = vpop.permute.xlu1 %497 }
 0x46b   :  { %v523_v9 = vsel %vm144_vm3, %v446_v62, %v498_v8 }
 0x46c   :  { %890 = vmatprep.subr.mxu1 %v523_v9 }
 0x46d   :  { %891 = vmatpush3.msra.mxu1 %v523_v9 }
 0x46e   :  { %v496_v11 = vpop.permute.xlu1 %495 }
 0x46f   :  { %v522_v12 = vsel %vm144_vm3, %v444_v63, %v496_v11 }
 0x470   :  { %892 = vmatprep.subr.mxu1 %v522_v12 }
 0x471   :  { %893 = vmatpush3.msra.mxu1 %v522_v12 }
 0x472   :  { %v494_v13 = vpop.permute.xlu1 %493 }
 0x473   :  { %v521_v14 = vsel %vm144_vm3, %v442_v0, %v494_v13 }
 0x474   :  { %894 = vmatprep.subr.mxu1 %v521_v14 }
 0x475   :  { %895 = vmatpush3.msra.mxu1 %v521_v14 }
 0x476   :  { %v492_v16 = vpop.permute.xlu1 %491 }
 0x477   :  { %v520_v17 = vsel %vm144_vm3, %v436_v7, %v492_v16 }
 0x478   :  { %896 = vmatprep.subr.mxu1 %v520_v17 }
 0x479   :  { %897 = vmatpush3.msra.mxu1 %v520_v17 }
 0x47a   :  { %v490_v19 = vpop.permute.xlu1 %489 }
 0x47b   :  { %v519_v20 = vsel %vm144_vm3, %v434_v10, %v490_v19 }
 0x47c   :  { %898 = vmatprep.subr.mxu1 %v519_v20 }
 0x47d   :  { %899 = vmatpush3.msra.mxu1 %v519_v20 }
 0x47e   :  { %v488_v21 = vpop.permute.xlu1 %487 }
 0x47f   :  { %v518_v22 = vsel %vm144_vm3, %v432_v15, %v488_v21 }
 0x480   :  { %900 = vmatprep.subr.mxu1 %v518_v22 }
 0x481   :  { %901 = vmatpush3.msra.mxu1 %v518_v22 }
 0x482   :  { %v486_v24 = vpop.permute.xlu1 %485 }
 0x483   :  { %v517_v25 = vsel %vm144_vm3, %v430_v18, %v486_v24 }
 0x484   :  { %902 = vmatprep.subr.mxu1 %v517_v25 }
 0x485   :  { %903 = vmatpush3.msra.mxu1 %v517_v25  ;;  %v704_v25 = vpop.permute.xlu0 %703 }
 0x486   :  { %v482_v28 = vpop.permute.xlu1 %481  ;;  %904 = vmatprep.subr.mxu1 %v516_v26 }
 0x487   :  { %905 = vmatpush3.msra.mxu1 %v516_v26  ;;  %v515_v29 = vsel %vm144_vm3, %v1191_v32, %v482_v28  ;;  %v527_v32 = vld [vmem:[%s1336_s6 + $0x10] sm:$0xff]  ;;  %s963_s6 = smov [#allocation5]  }
 0x488   :  { %906 = vmatprep.subr.mxu1 %v515_v29  ;;  %s823_s25 = sshll.u32 %s963_s6, 4  ;;  %s824_s25 = int_to_ptr.vmem [resolvable:$true] %s823_s25 }
 0x489   :  { %907 = vmatpush3.msra.mxu1 %v515_v29  ;;  %s933_s4 = scalar_lea.vmem %s824_s25, 32  ;;  %p938_p1 = scmp.lt.s32.totalorder %s824_s25, %s824_s25 }
 0x48a   :  { %v478_v35 = vpop.permute.xlu1 %477  ;;  %908 = vmatprep.subr.mxu1 %v514_v30  ;;  %p934_p0 = scmp.ne.s32.totalorder %s824_s25, %s933_s4  ;;  %p939_p2 = scmp.lt.s32.totalorder %s933_s4, %s933_s4 }
 0x48b   :  { %909 = vmatpush3.msra.mxu1 %v514_v30  ;;  %v513_v36 = vsel %vm144_vm3, %v1199_v34, %v478_v35  ;;  %v714_v30 = vpop.permute.xlu0 %713 }
 0x48c   :  { %910 = vmatprep.subr.mxu1 %v513_v36  ;;  %p940_p3 = por %p939_p2, %p938_p1 }
 0x48d   :  { %911 = vmatpush3.msra.mxu1 %v513_v36 }
 0x48e   :  { %913 = vmatmul.mubr.msk.f32.vlgmr.msra.gmra.mxu1 %vm553_vm5, %v526_v31  ;;  %p941_p4 = pnand %p940_p3, %p934_p0 }
 0x48f   :  { %915 = vmatprep.mubr.msk.f32.mxu1 %vm553_vm5, %v527_v32  ;;  %v737_v31 = vpop.permute.xlu0 %736 }
 0x492   :  { %916 = vmatmul.mubr.msk.f32.gmra.mxu1 %vm553_vm5, %v528_v33 }
 0x493   :  { %v742_v33 = vpop.permute.xlu0 %741 }
 0x497   :  { %v541_v34 = vpop.permute.xlu1 %540 }
 0x49b   :  { %v551_v42 = vpop.permute.xlu1 %550 }
 0x49f   :  { %v709_v27 = vpop.permute.xlu1 %708 }
 0x4a3   :  { %v732_v36 = vpop.permute.xlu1 %731 }
 0x4a7   :  { %v719_v32 = vpop.permute.xlu1 %718 }
 0x54e   :  { %v914_v38 = vpop.f32.mrf.mxu1 }
 0x54f   :  { %v638_v39 = vadd.f32 %v914_v38, %v541_v34  ;;  %v747_v34 = vpop.permute.xlu1 %746 }
 0x550   :  { %v632_v40 = vpop.f32.mrf.mxu1 }
 0x551   :  { %v633_v41 = vadd.f32 %v632_v40, %v536_v37  ;;  %v652_v44 = vmax.f32 %v638_v39, 0.0 }
 0x552   :  { %v917_v43 = vpop.f32.mrf.mxu1 }
 0x553   :  { %v651_v45 = vmax.f32 %v633_v41, 0.0  ;;  %v648_v46 = vadd.f32 %v917_v43, %v551_v42  ;;  %v656_v51 = vsel %vm281_vm4, %v652_v44, 0.0  ;;  %v764_v42 = vpop.permute.xlu0 %763 }
 0x554   :  { %v642_v48 = vpop.f32.mrf.mxu1 }
 0x555   :  { %v655_v49 = vsel %vm281_vm4, %v651_v45, 0.0  ;;  %v643_v50 = vadd.f32 %v642_v48, %v546_v47  ;;  %v654_v52 = vmax.f32 %v648_v46, 0.0  ;;  %v769_v47 = vpop.permute.xlu1 %768 }
 0x556   :  { %v657_v54 = vadd.f32 %v656_v51, %v655_v49 }
 0x557   :  { %v653_v53 = vmax.f32 %v643_v50, 0.0  ;;  %v660_v57 = vsel %vm281_vm4, %v654_v52, 0.0 }
 0x559   :  { %v658_v55 = vsel %vm281_vm4, %v653_v53, 0.0 }
 0x55a   :  { %v659_v56 = vadd.f32 %v658_v55, %v657_v54 }
 0x55c   :  { %v661_v58 = vadd.f32 %v660_v57, %v659_v56  ;;  %v774_v56 = vpop.permute.xlu0 %773 }
 0x55e   :  { %v662_v59 = vrot.slane %v661_v58, 4 }
 0x560   :  { %v663_v60 = vadd.f32 %v662_v59, %v661_v58 }
 0x562   :  { %v664_v61 = vrot.slane %v663_v60, 2 }
 0x564   :  { %v665_v62 = vadd.f32 %v664_v61, %v663_v60  ;;  %v779_v60 = vpop.permute.xlu1 %778 }
 0x566   :  { %v666_v63 = vrot.slane %v665_v62, 1 }
 0x568   :  { %v667_v0 = vadd.f32 %v666_v63, %v665_v62 }
 0x56a   :  { %v668_v1 = vmul.f32 0.03125, %v667_v0 }
 0x56c   :  { %v669_v3 = vsub.f32 %v651_v45, %v668_v1  ;;  %v670_v7 = vsub.f32 %v652_v44, %v668_v1  ;;  %v671_v8 = vsub.f32 %v653_v53, %v668_v1  ;;  %v672_v9 = vsub.f32 %v654_v52, %v668_v1 }
 0x56e   :  { %v673_v10 = vmul.f32 %v669_v3, %v669_v3  ;;  %v674_v11 = vmul.f32 %v670_v7, %v670_v7  ;;  %v675_v12 = vmul.f32 %v671_v8, %v671_v8  ;;  %v676_v13 = vmul.f32 %v672_v9, %v672_v9 }
 0x570   :  { %v677_v14 = vsel %vm281_vm4, %v673_v10, 0.0  ;;  %v678_v15 = vsel %vm281_vm4, %v674_v11, 0.0  ;;  %v680_v17 = vsel %vm281_vm4, %v675_v12, 0.0  ;;  %v682_v19 = vsel %vm281_vm4, %v676_v13, 0.0  ;;  %v802_v12 = vpop.permute.xlu0 %801 }
 0x571   :  { %v679_v16 = vadd.f32 %v678_v15, %v677_v14  ;;  %v807_v14 = vrot.slane %v802_v12, %v63_v5 }
 0x573   :  { %v681_v18 = vadd.f32 %v680_v17, %v679_v16 }
 0x575   :  { %v683_v20 = vadd.f32 %v682_v19, %v681_v18 }
 0x577   :  { %v684_v21 = vrot.slane %v683_v20, 4 }
 0x579   :  { %v685_v22 = vadd.f32 %v684_v21, %v683_v20 }
 0x57b   :  { %v686_v23 = vrot.slane %v685_v22, 2 }
 0x57d   :  { %v687_v24 = vadd.f32 %v686_v23, %v685_v22 }
 0x57f   :  { %v688_v26 = vrot.slane %v687_v24, 1 }
 0x581   :  { %v689_v28 = vadd.f32 %v688_v26, %v687_v24 }
 0x583   :  { %v690_v29 = vmul.f32 0.03125, %v689_v28 }
 0x585   :  { %v691_v35 = vadd.f32 1e-05, %v690_v29 }
 0x587   :  { %931 = vrsqrt.f32 %v691_v35 }
 0x594   :  { %v932_v37 = vpop.eup %931 }
 0x595   :  { %v693_v38 = vmul.f32 %v932_v37, %v669_v3  ;;  %v694_v39 = vmul.f32 %v932_v37, %v670_v7  ;;  %v695_v40 = vmul.f32 %v932_v37, %v671_v8  ;;  %v696_v41 = vmul.f32 %v932_v37, %v672_v9 }
 0x597   :  { %v721_v43 = vmul.f32 %v704_v25, %v693_v38  ;;  %v722_v44 = vmul.f32 %v709_v27, %v694_v39  ;;  %v723_v45 = vmul.f32 %v714_v30, %v695_v40  ;;  %v724_v46 = vmul.f32 %v719_v32, %v696_v41 }
 0x599   :  { %v749_v48 = vadd.f32 %v732_v36, %v721_v43  ;;  %v750_v49 = vadd.f32 %v737_v31, %v722_v44  ;;  %v751_v50 = vadd.f32 %v742_v33, %v723_v45  ;;  %v752_v51 = vadd.f32 %v747_v34, %v724_v46 }
 0x59b   :  { %v755_v52 = vmul.f32 %v751_v50, %v1043_v6  ;;  %v753_v53 = vmul.f32 %v749_v48, %v1043_v6  ;;  %v754_v54 = vmul.f32 %v750_v49, %v1043_v6  ;;  %v756_v55 = vmul.f32 %v752_v51, %v1043_v6 }
 0x59d   :  { %v783_v57 = vmul.f32 %v774_v56, %v755_v52  ;;  %v781_v58 = vmul.f32 %v764_v42, %v753_v53  ;;  %v782_v59 = vmul.f32 %v769_v47, %v754_v54  ;;  %v784_v61 = vmul.f32 %v779_v60, %v756_v55 }
 0x59f   :  { %v785_v62 = vsel %vm281_vm4, %v781_v58, 0.0  ;;  %v786_v63 = vsel %vm281_vm4, %v782_v59, 0.0  ;;  %v788_v1 = vsel %vm281_vm4, %v783_v57, 0.0  ;;  %v790_v7 = vsel %vm281_vm4, %v784_v61, 0.0 }
 0x5a0   :  { %v787_v0 = vadd.f32 %v786_v63, %v785_v62 }
 0x5a2   :  { %v789_v3 = vadd.f32 %v788_v1, %v787_v0 }
 0x5a4   :  { %v791_v8 = vadd.f32 %v790_v7, %v789_v3 }
 0x5a6   :  { %v792_v9 = vrot.slane %v791_v8, 4 }
 0x5a8   :  { %v793_v10 = vadd.f32 %v792_v9, %v791_v8 }
 0x5aa   :  { %v794_v6 = vrot.slane %v793_v10, 2 }
 0x5ac   :  { %v795_v11 = vadd.f32 %v794_v6, %v793_v10 }
 0x5ae   :  { %v796_v13 = vrot.slane %v795_v11, 1 }
 0x5b0   :  { %v797_v15 = vadd.f32 %v796_v13, %v795_v11 }
 0x5b2   :  { %v808_v16 = vadd.f32 %v807_v14, %v797_v15 }
 0x5b4   :  { %v809_v17 = vmul.f32 %v808_v16, %v1037_v4 }
 0x5b6   :  { %813 = vrot.lane.b32.xlu1 %v809_v17, %s956_s24  ;;  %811 = vst.msk [vmem:[#allocation5] sm:$0x1] %vm810_vm6, %v809_v17 }
 0x628   :  { %v814_v18 = vpop.permute.xlu1 %813 }
 0x629   :  { %817 = vst.msk [vmem:[#allocation5 + $0x1] sm:$0x1] %vm810_vm6, %v814_v18 }
 0x62a   :  { %944 = shalt.err (!%p941_p4)
}
 0x62b   :  { %829 = dma.vmem_to_hbm [thread:$0]  %s824_s25, 32, %s1342_s12, [#allocation6], %s960_s16, %s960_s16, %s957_s14  }
 0x62c   :  { %953 = dma.done.wait [#allocation6], 32  }
 0x62d   :  { %954 = vsyncadd [#allocation6], 4294967264 }
 0x62e   :  { %833 = vsyncpa [#allocation6], 1 }

</bundles_post_ra>
